<compile_context>
chip_gen: v5e
topology: v5e:2x2
jax: 0.10.0
libtpu: 0.0.40
codegen_flags: <defaults>
</compile_context>

<pallas_src>
import functools

import jax
import jax.numpy as jnp
from jax.experimental import pallas as pl
from jax.experimental.pallas import tpu as pltpu

_EPS = 1e-5          # nn.InstanceNorm2d default eps
_PADR = 8            # sublane-aligned zero border / inter-image gap (rows)


def _pick_bblk(B):
    """Images packed per grid step: fill the MXU M dim, but keep >= 2 grid steps."""
    if B < 4:
        return 1
    for cand in (8, 4, 2):
        if B % cand == 0 and B // cand >= 2:
            return cand
    return 1


def _conv_row_mats(w_hwio, W):
    """Fold a 3x3 conv (padding=1) along the width axis into 3 block-Toeplitz matrices.

    w_hwio: (3, 3, Cin, Cout).  Returns (3, W*Cin, W*Cout) with
      M[kh, w'*Cin+ci, t*Cout+co] = w[kh, w'-t+1, ci, co]  if 0 <= w'-t+1 <= 2 else 0,
    so that  out_row(h) = sum_kh  in_row(h+kh-1) @ M[kh]  reproduces the conv
    (width zero-padding is implicit in the matrix; height padding handled in-kernel).
    """
    _, _, Cin, Cout = w_hwio.shape
    wp = jnp.arange(W)[:, None]            # input column w'
    t = jnp.arange(W)[None, :]             # output column t
    kw = wp - t + 1                        # (W, W)
    valid = (kw >= 0) & (kw <= 2)
    kw_c = jnp.clip(kw, 0, 2)
    blocks = w_hwio[:, kw_c] * valid[None, :, :, None, None]   # (3, W, W, Cin, Cout)
    return blocks.transpose(0, 1, 3, 2, 4).reshape(3, W * Cin, W * Cout)


def _make_kernel(H, W, Cin, Cout, Bblk, eps, matmul_dtype):
    WCI, WCO = W * Cin, W * Cout
    GAP = _PADR
    STRIDE = H + GAP                       # per-image row stride inside the buffer
    ROWS = _PADR + Bblk * STRIDE           # top zero border + images with zero gaps
    HSPAN = Bblk * STRIDE - GAP            # rows covering all images + interior gaps
    inv_n = 1.0 / (H * W)

    def stage(dst_ref, imgs):
        """Stage Bblk (H, W*C) f32 images into the zero-bordered row buffer.

        Only the 8-row border/gap tiles are zero-filled (aligned 8-sublane stores);
        the image rows are written directly — no full-buffer memset.
        """
        wc = dst_ref.shape[1]
        dst_ref[0:_PADR, :] = jnp.zeros((_PADR, wc), jnp.float32)
        for b in range(Bblk):
            r0 = _PADR + b * STRIDE
            dst_ref[r0:r0 + H, :] = imgs[b]
            dst_ref[r0 + H:r0 + STRIDE, :] = jnp.zeros((GAP, wc), jnp.float32)

    def conv_in_relu(src_ref, m_ref, p2):
        """3x3 conv (bias dropped: cancelled by IN) + InstanceNorm2d + ReLU, per image."""
        x0 = src_ref[...]                                       # aligned full load
        acc = jnp.zeros((HSPAN, WCO), jnp.float32)
        for kh in range(3):                                     # 3 MXU matmuls, K = W*C
            # rows h+kh-1: XLU roll of the whole buffer (zero borders/gaps make the
            # wrap-around irrelevant), then an aligned value slice.
            xs = x0 if kh == 1 else pltpu.roll(x0, (1 - kh) % ROWS, 0)
            lhs = xs[_PADR:_PADR + HSPAN, :]
            acc = acc + jax.lax.dot_general(
                lhs.astype(matmul_dtype), m_ref[kh],
                dimension_numbers=(((1,), (0,)), ((), ())),
                preferred_element_type=jnp.float32)

        # Per-image InstanceNorm2d (affine=False, biased variance) + ReLU.
        outs = []
        for b in range(Bblk):
            a = acc[b * STRIDE:b * STRIDE + H, :]               # this image's output rows
            s = jnp.sum(a, axis=0, keepdims=True)               # (1, WCO)
            ss = jnp.sum(a * a, axis=0, keepdims=True)
            st = jnp.concatenate([s, ss], axis=1)               # (1, 2*WCO) lane concat
            red = jax.lax.dot_general(                          # ONE stats matmul / image
                st, p2, dimension_numbers=(((1,), (0,)), ((), ())),
                preferred_element_type=jnp.float32)
            mean = red[:, :WCO] * inv_n
            ex2 = red[:, WCO:] * inv_n
            var = jnp.maximum(ex2 - mean * mean, 0.0)
            y = (a - mean) * jax.lax.rsqrt(var + eps)
            outs.append(jnp.maximum(y, 0.0))                    # ReLU (Dropout2d == id, eval)
        return outs

    def kernel(x_ref, m1_ref, m2_ref, p2_ref, o_ref, xrow_ref, yrow_ref):
        p2 = p2_ref[...]
        stage(xrow_ref, [x_ref[b].astype(jnp.float32) for b in range(Bblk)])
        y1 = conv_in_relu(xrow_ref, m1_ref, p2)
        stage(yrow_ref, y1)                  # layer-1 activation never leaves VMEM
        y2 = conv_in_relu(yrow_ref, m2_ref, p2)
        for b in range(Bblk):
            o_ref[b] = y2[b].astype(o_ref.dtype)                # lane-dense (H, W*Cout) store

    return kernel, ROWS


@functools.partial(jax.jit, static_argnames=("matmul_dtype",))
def conv_block_forward(x_nchw, w1, b1, w2, b2, *, matmul_dtype=jnp.float32):
    """ConvBlock forward (eval mode).  NCHW in/out, matching the PyTorch module.

    Weights are HWIO (3, 3, Cin, Cout); convert a PyTorch OIHW state_dict with
    w_oihw.transpose(2, 3, 1, 0).  b1/b2 are accepted for interface parity, but a
    per-channel bias before InstanceNorm2d(affine=False) is cancelled exactly by the
    mean subtraction, so the kernel never reads them.
    """
    del b1, b2
    B, Cin, H, W = x_nchw.shape
    Cout = w1.shape[-1]
    assert H % 8 == 0, "H must be a multiple of 8 (sublane-aligned row staging)"
    WCI, WCO = W * Cin, W * Cout

    Bblk = _pick_bblk(B)
    steps = B // Bblk

    # Lane-dense (rows=H, lanes=W*C) activation layout; one fused XLA copy, no padding.
    x_rows = jnp.transpose(x_nchw, (0, 2, 3, 1)).reshape(B, H, WCI)

    m1 = _conv_row_mats(w1, W).astype(matmul_dtype)     # (3, W*Cin,  W*Cout)
    m2 = _conv_row_mats(w2, W).astype(matmul_dtype)     # (3, W*Cout, W*Cout)

    # Channel reducer for [sum | sum^2] in one matmul: p[j,k] = [j%Cout == k%Cout],
    # p2 = blockdiag(p, p).
    lane = jnp.arange(WCO)
    p = (lane[:, None] % Cout == lane[None, :] % Cout).astype(jnp.float32)
    z = jnp.zeros_like(p)
    p2 = jnp.concatenate(
        [jnp.concatenate([p, z], axis=1), jnp.concatenate([z, p], axis=1)], axis=0)

    kernel, rows = _make_kernel(H, W, Cin, Cout, Bblk, _EPS, matmul_dtype)

    hspan = Bblk * (H + _PADR) - _PADR
    flops = steps * (3 * 2 * hspan * WCI * WCO + 3 * 2 * hspan * WCO * WCO
                     + Bblk * 2 * 2 * (2 * WCO) * (2 * WCO))
    bytes_accessed = 4 * (B * H * (WCI + WCO) + 3 * WCI * WCO + 3 * WCO * WCO
                          + 4 * WCO * WCO)

    out_rows = pl.pallas_call(
        kernel,
        out_shape=jax.ShapeDtypeStruct((B, H, WCO), x_nchw.dtype),
        grid_spec=pltpu.PrefetchScalarGridSpec(
            num_scalar_prefetch=0,
            grid=(steps,),
            in_specs=[
                pl.BlockSpec((Bblk, H, WCI), lambda g: (g, 0, 0)),    # packed activations
                pl.BlockSpec((3, WCI, WCO), lambda g: (0, 0, 0)),     # conv-1 Toeplitz (resident)
                pl.BlockSpec((3, WCO, WCO), lambda g: (0, 0, 0)),     # conv-2 Toeplitz (resident)
                pl.BlockSpec((2 * WCO, 2 * WCO), lambda g: (0, 0)),   # stats reducer (resident)
            ],
            out_specs=pl.BlockSpec((Bblk, H, WCO), lambda g: (g, 0, 0)),
            scratch_shapes=[
                pltpu.VMEM((rows, WCI), jnp.float32),   # packed zero-bordered input rows
                pltpu.VMEM((rows, WCO), jnp.float32),   # packed zero-bordered layer-1 act
            ],
        ),
        compiler_params=pltpu.CompilerParams(
            dimension_semantics=("parallel",),
            vmem_limit_bytes=32 * 1024 * 1024,
        ),
        cost_estimate=pl.CostEstimate(
            flops=flops, transcendentals=B * 2 * WCO, bytes_accessed=bytes_accessed),
    )(x_rows, m1, m2, p2)

    return jnp.transpose(out_rows.reshape(B, H, W, Cout), (0, 3, 1, 2))


def _reference_forward(x, w1, b1, w2, b2):
    """Pure-JAX/XLA reference (eval-mode ConvBlock) for a correctness check."""
    def layer(inp, w, b):
        out = jax.lax.conv_general_dilated(
            inp, w, window_strides=(1, 1), padding=((1, 1), (1, 1)),
            dimension_numbers=("NCHW", "HWIO", "NCHW"),
            precision=jax.lax.Precision.HIGHEST)
        out = out + b[None, :, None, None]
        mean = out.mean(axis=(2, 3), keepdims=True)
        var = out.var(axis=(2, 3), keepdims=True)               # biased, like InstanceNorm2d
        out = (out - mean) * jax.lax.rsqrt(var + _EPS)
        return jnp.maximum(out, 0.0)
    return layer(layer(x, w1, b1), w2, b2)


def init_params(key, in_chans, out_chans):
    """Deterministic synthetic parameters with the same shapes as the nn.Module.

    Weights are HWIO (3, 3, Cin, Cout).  PyTorch Conv2d stores OIHW; to load a real
    checkpoint, use w_hwio = w_oihw.transpose(2, 3, 1, 0).
    """
    k1, k2, k3, k4 = jax.random.split(key, 4)
    w1 = 0.1 * jax.random.normal(k1, (3, 3, in_chans, out_chans), jnp.float32)
    b1 = 0.1 * jax.random.normal(k2, (out_chans,), jnp.float32)
    w2 = 0.1 * jax.random.normal(k3, (3, 3, out_chans, out_chans), jnp.float32)
    b2 = 0.1 * jax.random.normal(k4, (out_chans,), jnp.float32)
    return w1, b1, w2, b2


if __name__ == "__main__":
    B, IN_CHANS, OUT_CHANS, H, W = 2, 4, 8, 16, 16
    DROP_PROB = 0.1  # unused in eval-mode forward (Dropout2d == identity)

    key = jax.random.PRNGKey(0)
    kx, kp, kx2 = jax.random.split(key, 3)
    x = jax.random.normal(kx, (B, IN_CHANS, H, W), jnp.float32)
    w1, b1, w2, b2 = init_params(kp, IN_CHANS, OUT_CHANS)

    # f32 path: exact parity with the XLA reference.
    out = conv_block_forward(x, w1, b1, w2, b2)
    jax.block_until_ready(out)
    assert out.shape == (B, OUT_CHANS, H, W), out.shape
    assert bool(jnp.all(jnp.isfinite(out)))
    ref = _reference_forward(x, w1, b1, w2, b2)
    err = float(jnp.max(jnp.abs(out - ref)))
    assert err < 1e-3, f"mismatch vs reference: {err}"

    # Batch-packed path (B=8 -> Bblk=4, 2 grid steps): exercises the M-packing code.
    xb = jax.random.normal(kx2, (8, IN_CHANS, H, W), jnp.float32)
    outb = conv_block_forward(xb, w1, b1, w2, b2)
    jax.block_until_ready(outb)
    errb = float(jnp.max(jnp.abs(outb - _reference_forward(xb, w1, b1, w2, b2))))
    assert errb < 1e-3, f"packed-batch mismatch vs reference: {errb}"

    # bf16 matmul operands (recommended on v6e/v7x); loose tolerance by design.
    outh = conv_block_forward(x, w1, b1, w2, b2, matmul_dtype=jnp.bfloat16)
    jax.block_until_ready(outh)
    assert bool(jnp.all(jnp.isfinite(outh)))
    errh = float(jnp.max(jnp.abs(outh - ref)))
    assert errh < 0.25, f"bf16 path diverged from reference: {errh}"

    print("KERNEL_OK")
</pallas_src>

<mosaic_0001>
module attributes {stable_mosaic.version = 11 : i64} {
  func.func @kernel(%arg0: i32, %arg1: memref<1x16x64xf32, #tpu.memory_space<vmem>>, %arg2: memref<3x64x128xf32, #tpu.memory_space<vmem>>, %arg3: memref<3x128x128xf32, #tpu.memory_space<vmem>>, %arg4: memref<256x256xf32, #tpu.memory_space<vmem>>, %arg5: memref<1x16x128xf32, #tpu.memory_space<vmem>>, %arg6: memref<32x64xf32, #tpu.memory_space<vmem>>, %arg7: memref<32x128xf32, #tpu.memory_space<vmem>>) attributes {dimension_semantics = [#tpu.dimension_semantics<parallel>], iteration_bounds = array<i64: 2>, scalar_prefetch = 0 : i64, scratch_operands = 2 : i64, tpu.core_type = #tpu.core_type<tc>, window_params = [{transform_indices = @transform_0, window_bounds = array<i64: 1, 16, 64>}, {pipeline_mode = #tpu.pipeline_mode<synchronous>, transform_indices = @transform_1, window_bounds = array<i64: 3, 64, 128>}, {pipeline_mode = #tpu.pipeline_mode<synchronous>, transform_indices = @transform_2, window_bounds = array<i64: 3, 128, 128>}, {pipeline_mode = #tpu.pipeline_mode<synchronous>, transform_indices = @transform_3, window_bounds = array<i64: 256, 256>}, {transform_indices = @transform_4, window_bounds = array<i64: 1, 16, 128>}]} {
    %c0 = arith.constant 0 : index
    %c0_0 = arith.constant 0 : index
    %0 = vector.load %arg4[%c0, %c0_0] : memref<256x256xf32, #tpu.memory_space<vmem>>, vector<256x256xf32>
    %c0_1 = arith.constant 0 : index
    %c0_2 = arith.constant 0 : index
    %c0_3 = arith.constant 0 : index
    %1 = vector.load %arg1[%c0_1, %c0_2, %c0_3] : memref<1x16x64xf32, #tpu.memory_space<vmem>>, vector<1x16x64xf32>
    %2 = vector.shape_cast %1 : vector<1x16x64xf32> to vector<16x64xf32>
    %cst = arith.constant 0.000000e+00 : f32
    %3 = vector.broadcast %cst : f32 to vector<8x64xf32>
    %c0_4 = arith.constant 0 : index
    %c0_5 = arith.constant 0 : index
    %4 = vector.load %arg6[%c0_4, %c0_5] : memref<32x64xf32, #tpu.memory_space<vmem>>, vector<8x64xf32>
    tpu.vector_store %arg6[%c0_4, %c0_5], %3 {strides = array<i32>} : memref<32x64xf32, #tpu.memory_space<vmem>>, vector<8x64xf32>,
    %c8 = arith.constant 8 : index
    %c0_6 = arith.constant 0 : index
    %5 = vector.load %arg6[%c8, %c0_6] : memref<32x64xf32, #tpu.memory_space<vmem>>, vector<16x64xf32>
    tpu.vector_store %arg6[%c8, %c0_6], %2 {strides = array<i32>} : memref<32x64xf32, #tpu.memory_space<vmem>>, vector<16x64xf32>,
    %cst_7 = arith.constant 0.000000e+00 : f32
    %6 = vector.broadcast %cst_7 : f32 to vector<8x64xf32>
    %c24 = arith.constant 24 : index
    %c0_8 = arith.constant 0 : index
    %7 = vector.load %arg6[%c24, %c0_8] : memref<32x64xf32, #tpu.memory_space<vmem>>, vector<8x64xf32>
    tpu.vector_store %arg6[%c24, %c0_8], %6 {strides = array<i32>} : memref<32x64xf32, #tpu.memory_space<vmem>>, vector<8x64xf32>,
    %c0_9 = arith.constant 0 : index
    %c0_10 = arith.constant 0 : index
    %8 = vector.load %arg6[%c0_9, %c0_10] : memref<32x64xf32, #tpu.memory_space<vmem>>, vector<32x64xf32>
    %cst_11 = arith.constant 0.000000e+00 : f32
    %9 = vector.broadcast %cst_11 : f32 to vector<16x128xf32>
    %c1_i32 = arith.constant 1 : i32
    %10 = tpu.dynamic_rotate %8 by %c1_i32 dim 0 : vector<32x64xf32>, i32 -> vector<32x64xf32>
    %11 = vector.extract_strided_slice %10 {offsets = [8, 0], sizes = [16, 64], strides = [1, 1]} : vector<32x64xf32> to vector<16x64xf32>
    %c0_12 = arith.constant 0 : index
    %c0_13 = arith.constant 0 : index
    %c0_14 = arith.constant 0 : index
    %12 = vector.load %arg2[%c0_12, %c0_13, %c0_14] : memref<3x64x128xf32, #tpu.memory_space<vmem>>, vector<1x64x128xf32>
    %13 = vector.shape_cast %12 : vector<1x64x128xf32> to vector<64x128xf32>
    %cst_15 = arith.constant dense<0.000000e+00> : vector<16x128xf32>
    %14 = tpu.matmul %11, %13, %cst_15 {dimension_numbers = #tpu.dot_dimension_numbers<[1], [0], [0], [1], [0, 0, 1, 1], [], []>} : vector<16x64xf32>, vector<64x128xf32>, vector<16x128xf32> -> vector<16x128xf32>
    %15 = arith.addf %9, %14 : vector<16x128xf32>
    %16 = vector.extract_strided_slice %8 {offsets = [8, 0], sizes = [16, 64], strides = [1, 1]} : vector<32x64xf32> to vector<16x64xf32>
    %c1 = arith.constant 1 : index
    %c0_16 = arith.constant 0 : index
    %c0_17 = arith.constant 0 : index
    %17 = vector.load %arg2[%c1, %c0_16, %c0_17] : memref<3x64x128xf32, #tpu.memory_space<vmem>>, vector<1x64x128xf32>
    %18 = vector.shape_cast %17 : vector<1x64x128xf32> to vector<64x128xf32>
    %cst_18 = arith.constant dense<0.000000e+00> : vector<16x128xf32>
    %19 = tpu.matmul %16, %18, %cst_18 {dimension_numbers = #tpu.dot_dimension_numbers<[1], [0], [0], [1], [0, 0, 1, 1], [], []>} : vector<16x64xf32>, vector<64x128xf32>, vector<16x128xf32> -> vector<16x128xf32>
    %20 = arith.addf %15, %19 : vector<16x128xf32>
    %c31_i32 = arith.constant 31 : i32
    %21 = tpu.dynamic_rotate %8 by %c31_i32 dim 0 : vector<32x64xf32>, i32 -> vector<32x64xf32>
    %22 = vector.extract_strided_slice %21 {offsets = [8, 0], sizes = [16, 64], strides = [1, 1]} : vector<32x64xf32> to vector<16x64xf32>
    %c2 = arith.constant 2 : index
    %c0_19 = arith.constant 0 : index
    %c0_20 = arith.constant 0 : index
    %23 = vector.load %arg2[%c2, %c0_19, %c0_20] : memref<3x64x128xf32, #tpu.memory_space<vmem>>, vector<1x64x128xf32>
    %24 = vector.shape_cast %23 : vector<1x64x128xf32> to vector<64x128xf32>
    %cst_21 = arith.constant dense<0.000000e+00> : vector<16x128xf32>
    %25 = tpu.matmul %22, %24, %cst_21 {dimension_numbers = #tpu.dot_dimension_numbers<[1], [0], [0], [1], [0, 0, 1, 1], [], []>} : vector<16x64xf32>, vector<64x128xf32>, vector<16x128xf32> -> vector<16x128xf32>
    %26 = arith.addf %20, %25 : vector<16x128xf32>
    %cst_22 = arith.constant dense<0.000000e+00> : vector<128xf32>
    %27 = vector.multi_reduction <add>, %26, %cst_22 [0] : vector<16x128xf32> to vector<128xf32>
    %28 = vector.shape_cast %27 : vector<128xf32> to vector<1x128xf32>
    %29 = arith.mulf %26, %26 : vector<16x128xf32>
    %cst_23 = arith.constant dense<0.000000e+00> : vector<128xf32>
    %30 = vector.multi_reduction <add>, %29, %cst_23 [0] : vector<16x128xf32> to vector<128xf32>
    %31 = vector.shape_cast %30 : vector<128xf32> to vector<1x128xf32>
    %32 = tpu.concatenate %28, %31 in 1 : vector<1x128xf32>, vector<1x128xf32> -> vector<1x256xf32>
    %cst_24 = arith.constant dense<0.000000e+00> : vector<1x256xf32>
    %33 = tpu.matmul %32, %0, %cst_24 {dimension_numbers = #tpu.dot_dimension_numbers<[1], [0], [0], [1], [0, 0, 1, 1], [], []>} : vector<1x256xf32>, vector<256x256xf32>, vector<1x256xf32> -> vector<1x256xf32>
    %34 = vector.extract_strided_slice %33 {offsets = [0, 0], sizes = [1, 128], strides = [1, 1]} : vector<1x256xf32> to vector<1x128xf32>
    %cst_25 = arith.constant 3.906250e-03 : f32
    %35 = vector.broadcast %cst_25 : f32 to vector<1x128xf32>
    %36 = arith.mulf %34, %35 : vector<1x128xf32>
    %37 = vector.extract_strided_slice %33 {offsets = [0, 128], sizes = [1, 128], strides = [1, 1]} : vector<1x256xf32> to vector<1x128xf32>
    %cst_26 = arith.constant 3.906250e-03 : f32
    %38 = vector.broadcast %cst_26 : f32 to vector<1x128xf32>
    %39 = arith.mulf %37, %38 : vector<1x128xf32>
    %40 = arith.mulf %36, %36 : vector<1x128xf32>
    %41 = arith.subf %39, %40 : vector<1x128xf32>
    %cst_27 = arith.constant 0.000000e+00 : f32
    %42 = vector.broadcast %cst_27 : f32 to vector<1x128xf32>
    %43 = arith.maximumf %41, %42 : vector<1x128xf32>
    %44 = vector.broadcast %36 : vector<1x128xf32> to vector<16x128xf32>
    %45 = arith.subf %26, %44 : vector<16x128xf32>
    %cst_28 = arith.constant 9.99999974E-6 : f32
    %46 = vector.broadcast %cst_28 : f32 to vector<1x128xf32>
    %47 = arith.addf %43, %46 : vector<1x128xf32>
    %48 = math.rsqrt %47 : vector<1x128xf32>
    %49 = vector.broadcast %48 : vector<1x128xf32> to vector<16x128xf32>
    %50 = arith.mulf %45, %49 : vector<16x128xf32>
    %cst_29 = arith.constant 0.000000e+00 : f32
    %51 = vector.broadcast %cst_29 : f32 to vector<16x128xf32>
    %52 = arith.maximumf %50, %51 : vector<16x128xf32>
    %cst_30 = arith.constant 0.000000e+00 : f32
    %53 = vector.broadcast %cst_30 : f32 to vector<8x128xf32>
    %c0_31 = arith.constant 0 : index
    %c0_32 = arith.constant 0 : index
    %54 = vector.load %arg7[%c0_31, %c0_32] : memref<32x128xf32, #tpu.memory_space<vmem>>, vector<8x128xf32>
    tpu.vector_store %arg7[%c0_31, %c0_32], %53 {strides = array<i32>} : memref<32x128xf32, #tpu.memory_space<vmem>>, vector<8x128xf32>,
    %c8_33 = arith.constant 8 : index
    %c0_34 = arith.constant 0 : index
    %55 = vector.load %arg7[%c8_33, %c0_34] : memref<32x128xf32, #tpu.memory_space<vmem>>, vector<16x128xf32>
    tpu.vector_store %arg7[%c8_33, %c0_34], %52 {strides = array<i32>} : memref<32x128xf32, #tpu.memory_space<vmem>>, vector<16x128xf32>,
    %cst_35 = arith.constant 0.000000e+00 : f32
    %56 = vector.broadcast %cst_35 : f32 to vector<8x128xf32>
    %c24_36 = arith.constant 24 : index
    %c0_37 = arith.constant 0 : index
    %57 = vector.load %arg7[%c24_36, %c0_37] : memref<32x128xf32, #tpu.memory_space<vmem>>, vector<8x128xf32>
    tpu.vector_store %arg7[%c24_36, %c0_37], %56 {strides = array<i32>} : memref<32x128xf32, #tpu.memory_space<vmem>>, vector<8x128xf32>,
    %c0_38 = arith.constant 0 : index
    %c0_39 = arith.constant 0 : index
    %58 = vector.load %arg7[%c0_38, %c0_39] : memref<32x128xf32, #tpu.memory_space<vmem>>, vector<32x128xf32>
    %cst_40 = arith.constant 0.000000e+00 : f32
    %59 = vector.broadcast %cst_40 : f32 to vector<16x128xf32>
    %c1_i32_41 = arith.constant 1 : i32
    %60 = tpu.dynamic_rotate %58 by %c1_i32_41 dim 0 : vector<32x128xf32>, i32 -> vector<32x128xf32>
    %61 = vector.extract_strided_slice %60 {offsets = [8, 0], sizes = [16, 128], strides = [1, 1]} : vector<32x128xf32> to vector<16x128xf32>
    %c0_42 = arith.constant 0 : index
    %c0_43 = arith.constant 0 : index
    %c0_44 = arith.constant 0 : index
    %62 = vector.load %arg3[%c0_42, %c0_43, %c0_44] : memref<3x128x128xf32, #tpu.memory_space<vmem>>, vector<1x128x128xf32>
    %63 = vector.shape_cast %62 : vector<1x128x128xf32> to vector<128x128xf32>
    %cst_45 = arith.constant dense<0.000000e+00> : vector<16x128xf32>
    %64 = tpu.matmul %61, %63, %cst_45 {dimension_numbers = #tpu.dot_dimension_numbers<[1], [0], [0], [1], [0, 0, 1, 1], [], []>} : vector<16x128xf32>, vector<128x128xf32>, vector<16x128xf32> -> vector<16x128xf32>
    %65 = arith.addf %59, %64 : vector<16x128xf32>
    %66 = vector.extract_strided_slice %58 {offsets = [8, 0], sizes = [16, 128], strides = [1, 1]} : vector<32x128xf32> to vector<16x128xf32>
    %c1_46 = arith.constant 1 : index
    %c0_47 = arith.constant 0 : index
    %c0_48 = arith.constant 0 : index
    %67 = vector.load %arg3[%c1_46, %c0_47, %c0_48] : memref<3x128x128xf32, #tpu.memory_space<vmem>>, vector<1x128x128xf32>
    %68 = vector.shape_cast %67 : vector<1x128x128xf32> to vector<128x128xf32>
    %cst_49 = arith.constant dense<0.000000e+00> : vector<16x128xf32>
    %69 = tpu.matmul %66, %68, %cst_49 {dimension_numbers = #tpu.dot_dimension_numbers<[1], [0], [0], [1], [0, 0, 1, 1], [], []>} : vector<16x128xf32>, vector<128x128xf32>, vector<16x128xf32> -> vector<16x128xf32>
    %70 = arith.addf %65, %69 : vector<16x128xf32>
    %c31_i32_50 = arith.constant 31 : i32
    %71 = tpu.dynamic_rotate %58 by %c31_i32_50 dim 0 : vector<32x128xf32>, i32 -> vector<32x128xf32>
    %72 = vector.extract_strided_slice %71 {offsets = [8, 0], sizes = [16, 128], strides = [1, 1]} : vector<32x128xf32> to vector<16x128xf32>
    %c2_51 = arith.constant 2 : index
    %c0_52 = arith.constant 0 : index
    %c0_53 = arith.constant 0 : index
    %73 = vector.load %arg3[%c2_51, %c0_52, %c0_53] : memref<3x128x128xf32, #tpu.memory_space<vmem>>, vector<1x128x128xf32>
    %74 = vector.shape_cast %73 : vector<1x128x128xf32> to vector<128x128xf32>
    %cst_54 = arith.constant dense<0.000000e+00> : vector<16x128xf32>
    %75 = tpu.matmul %72, %74, %cst_54 {dimension_numbers = #tpu.dot_dimension_numbers<[1], [0], [0], [1], [0, 0, 1, 1], [], []>} : vector<16x128xf32>, vector<128x128xf32>, vector<16x128xf32> -> vector<16x128xf32>
    %76 = arith.addf %70, %75 : vector<16x128xf32>
    %cst_55 = arith.constant dense<0.000000e+00> : vector<128xf32>
    %77 = vector.multi_reduction <add>, %76, %cst_55 [0] : vector<16x128xf32> to vector<128xf32>
    %78 = vector.shape_cast %77 : vector<128xf32> to vector<1x128xf32>
    %79 = arith.mulf %76, %76 : vector<16x128xf32>
    %cst_56 = arith.constant dense<0.000000e+00> : vector<128xf32>
    %80 = vector.multi_reduction <add>, %79, %cst_56 [0] : vector<16x128xf32> to vector<128xf32>
    %81 = vector.shape_cast %80 : vector<128xf32> to vector<1x128xf32>
    %82 = tpu.concatenate %78, %81 in 1 : vector<1x128xf32>, vector<1x128xf32> -> vector<1x256xf32>
    %cst_57 = arith.constant dense<0.000000e+00> : vector<1x256xf32>
    %83 = tpu.matmul %82, %0, %cst_57 {dimension_numbers = #tpu.dot_dimension_numbers<[1], [0], [0], [1], [0, 0, 1, 1], [], []>} : vector<1x256xf32>, vector<256x256xf32>, vector<1x256xf32> -> vector<1x256xf32>
    %84 = vector.extract_strided_slice %83 {offsets = [0, 0], sizes = [1, 128], strides = [1, 1]} : vector<1x256xf32> to vector<1x128xf32>
    %cst_58 = arith.constant 3.906250e-03 : f32
    %85 = vector.broadcast %cst_58 : f32 to vector<1x128xf32>
    %86 = arith.mulf %84, %85 : vector<1x128xf32>
    %87 = vector.extract_strided_slice %83 {offsets = [0, 128], sizes = [1, 128], strides = [1, 1]} : vector<1x256xf32> to vector<1x128xf32>
    %cst_59 = arith.constant 3.906250e-03 : f32
    %88 = vector.broadcast %cst_59 : f32 to vector<1x128xf32>
    %89 = arith.mulf %87, %88 : vector<1x128xf32>
    %90 = arith.mulf %86, %86 : vector<1x128xf32>
    %91 = arith.subf %89, %90 : vector<1x128xf32>
    %cst_60 = arith.constant 0.000000e+00 : f32
    %92 = vector.broadcast %cst_60 : f32 to vector<1x128xf32>
    %93 = arith.maximumf %91, %92 : vector<1x128xf32>
    %94 = vector.broadcast %86 : vector<1x128xf32> to vector<16x128xf32>
    %95 = arith.subf %76, %94 : vector<16x128xf32>
    %cst_61 = arith.constant 9.99999974E-6 : f32
    %96 = vector.broadcast %cst_61 : f32 to vector<1x128xf32>
    %97 = arith.addf %93, %96 : vector<1x128xf32>
    %98 = math.rsqrt %97 : vector<1x128xf32>
    %99 = vector.broadcast %98 : vector<1x128xf32> to vector<16x128xf32>
    %100 = arith.mulf %95, %99 : vector<16x128xf32>
    %cst_62 = arith.constant 0.000000e+00 : f32
    %101 = vector.broadcast %cst_62 : f32 to vector<16x128xf32>
    %102 = arith.maximumf %100, %101 : vector<16x128xf32>
    %c0_63 = arith.constant 0 : index
    %c0_64 = arith.constant 0 : index
    %c0_65 = arith.constant 0 : index
    %103 = vector.load %arg5[%c0_63, %c0_64, %c0_65] : memref<1x16x128xf32, #tpu.memory_space<vmem>>, vector<1x16x128xf32>
    %104 = vector.shape_cast %103 : vector<1x16x128xf32> to vector<16x128xf32>
    %105 = vector.shape_cast %102 : vector<16x128xf32> to vector<1x16x128xf32>
    tpu.vector_store %arg5[%c0_63, %c0_64, %c0_65], %105 {strides = array<i32>} : memref<1x16x128xf32, #tpu.memory_space<vmem>>, vector<1x16x128xf32>,
    return
  }
  func.func @transform_0(%arg0: i32) -> (i32, i32, i32) {
    %c0_i32 = arith.constant 0 : i32
    %c0_i32_0 = arith.constant 0 : i32
    %c0_i32_1 = arith.constant 0 : i32
    return %arg0, %c0_i32, %c0_i32_0 : i32, i32, i32
  }
  func.func @transform_1(%arg0: i32) -> (i32, i32, i32) {
    %c0_i32 = arith.constant 0 : i32
    %c0_i32_0 = arith.constant 0 : i32
    %c0_i32_1 = arith.constant 0 : i32
    %c0_i32_2 = arith.constant 0 : i32
    return %c0_i32, %c0_i32_0, %c0_i32_1 : i32, i32, i32
  }
  func.func @transform_2(%arg0: i32) -> (i32, i32, i32) {
    %c0_i32 = arith.constant 0 : i32
    %c0_i32_0 = arith.constant 0 : i32
    %c0_i32_1 = arith.constant 0 : i32
    %c0_i32_2 = arith.constant 0 : i32
    return %c0_i32, %c0_i32_0, %c0_i32_1 : i32, i32, i32
  }
  func.func @transform_3(%arg0: i32) -> (i32, i32) {
    %c0_i32 = arith.constant 0 : i32
    %c0_i32_0 = arith.constant 0 : i32
    %c0_i32_1 = arith.constant 0 : i32
    return %c0_i32, %c0_i32_0 : i32, i32
  }
  func.func @transform_4(%arg0: i32) -> (i32, i32, i32) {
    %c0_i32 = arith.constant 0 : i32
    %c0_i32_0 = arith.constant 0 : i32
    %c0_i32_1 = arith.constant 0 : i32
    return %arg0, %c0_i32, %c0_i32_0 : i32, i32, i32
  }
}

</mosaic_0001>

<bundles_post_ra>
// kernel: conv_block_forward.1
= control target key start
LH: loop header
LB: loop body
LE: loop exit
PB: predicated region body
PF: predicated region fallthrough
CT: control target
= control target key end

     0   :  { %s952_s15 = smov 0   ;;  %s1683_s0 = inlined_call_operand.vmem [shape: f32[2,16,64], index: 0, kind: input, shape index: {}]   ;;  %s1684_s1 = inlined_call_operand.vmem [shape: f32[3,64,128], index: 1, kind: input, shape index: {}]   ;;  %s1685_s2 = inlined_call_operand.vmem [shape: f32[3,128,128], index: 2, kind: input, shape index: {}]   ;;  %s1686_s3 = inlined_call_operand.vmem [shape: f32[256,256], index: 3, kind: input, shape index: {}]   ;;  %s1687_s4 = inlined_call_operand.vmem [shape: f32[2,16,128], index: 4, kind: output, shape index: {}]  }
   0x1 LB: > { %s838_s16 = sadd.s32 4294967295, %s924_s15   ;;  %p842_p0 = scmp.ge.s32.totalorder %s924_s15, 1  ;;  %s924_s15 = sphi %s952_s15, %s14_s15  }
   0x2   : > { %p162_p1 = scmp.lt.s32.totalorder %s924_s15, 3 }
   0x4   : > { %p163_p2 = pnand %p842_p0, %p162_p1 }
   0x6   : > { %166 = sbr.rel (%p163_p2) target bundleno = 697 (0x2b9), region = 36 }
   0xb   : > { %v854_v0 = vld [vmem:[%s1684_s1 + $0x78] sm:$0xff]  ;;  %v853_v1 = vld [vmem:[%s1684_s1 + $0x70] sm:$0xff]  ;;  %p188_p3 = scmp.lt.s32.totalorder %s838_s16, 1  ;;  %vm264_vm0 = vcmask 523264   ;;  %v1688_v3 = vmov 0.0   ;;  %v852_v4 = vld [vmem:[%s1684_s1 + $0x68] sm:$0xff]  ;;  %v276_v11 = vlaneseq }
   0xc   : > { %312 = vmatpush.msra.mxu2 %v854_v0  ;;  %v288_v2 = vld [vmem:[%s1684_s1 + $0x38] sm:$0xff]  ;;  %265 = vst.msk [vmem:[#allocation2] sm:$0xff] %vm264_vm0, %v1688_v3  ;;  %v287_v5 = vld [vmem:[%s1684_s1 + $0x30] sm:$0xff]  ;;  %v286_v6 = vld [vmem:[%s1684_s1 + $0x28] sm:$0xff] }
   0xd   : > { %341 = vmatpush.msra.mxu1 %v288_v2  ;;  %s1723_s16 = smov (!%p188_p3, %s838_s16), 1  ;;  %268 = vst.msk [vmem:[#allocation2 + $0x18] sm:$0xff] %vm264_vm0, %v1688_v3  ;;  %v851_v7 = vld [vmem:[%s1684_s1 + $0x60] sm:$0xff]  ;;  %v850_v9 = vld [vmem:[%s1684_s1 + $0x58] sm:$0xff]  ;;  %v849_v14 = vld [vmem:[%s1684_s1 + $0x50] sm:$0xff]  ;;  %v1013_v18 = vshrl.u32 %v276_v11, 7 }
   0xe   : > { %313 = vmatpush.msra.mxu2 %v853_v1  ;;  %s903_s5 = sshll.u32 %s1723_s16, 4  ;;  %v285_v8 = vld [vmem:[%s1684_s1 + $0x20] sm:$0xff]  ;;  %v284_v12 = vld [vmem:[%s1684_s1 + $0x18] sm:$0xff]  ;;  %v283_v15 = vld [vmem:[%s1684_s1 + $0x10] sm:$0xff] }
   0xf   : > { %342 = vmatpush.msra.mxu1 %v287_v5  ;;  %s192_s10 = scalar_lea.vmem %s1683_s0, %s903_s5  ;;  %v848_v16 = vld [vmem:[%s1684_s1 + $0x48] sm:$0xff]  ;;  %1701 = vst [vmem:[#allocation4_spill] sm:$0xff] %v1013_v18  ;;  %v847_v20 = vld [vmem:[%s1684_s1 + $0x40] sm:$0xff]  ;;  %v866_v24 = vld [vmem:[%s1684_s1 + $0xb8] sm:$0xff]  ;;  %vm278_vm1 = vcmp.lt.s32.totalorder %v1013_v18, 1  ;;  %vm359_vm2 = vcmp.lt.s32.totalorder %v1013_v18, 7  ;;  %s197_s18 = scalar_lea.vmem %s1687_s4, %s903_s5 }
  0x10   : > { %314 = vmatpush.msra.mxu2 %v852_v4  ;;  %v262_v10 = vld [vmem:[%s192_s10] sm:$0xff]  ;;  %v263_v13 = vld [vmem:[%s192_s10 + $0x8] sm:$0xff]  ;;  %v865_v26 = vld [vmem:[%s1684_s1 + $0xb0] sm:$0xff] }
  0x11   : > { %343 = vmatpush.msra.mxu1 %v286_v6  ;;  %266 = vst.msk [vmem:[#allocation2 + $0x8] sm:$0xff] %vm264_vm0, %v262_v10  ;;  %v282_v19 = vld [vmem:[%s1684_s1 + $0x8] sm:$0xff]  ;;  %v281_v21 = vld [vmem:[%s1684_s1] sm:$0xff]  ;;  %v862_v32 = vld [vmem:[%s1684_s1 + $0x98] sm:$0xff] }
  0x12   : > { %315 = vmatpush.msra.mxu2 %v851_v7  ;;  %267 = vst.msk [vmem:[#allocation2 + $0x10] sm:$0xff] %vm264_vm0, %v263_v13  ;;  %v864_v28 = vld [vmem:[%s1684_s1 + $0xa8] sm:$0xff]  ;;  %v863_v31 = vld [vmem:[%s1684_s1 + $0xa0] sm:$0xff]  ;;  %v861_v34 = vld [vmem:[%s1684_s1 + $0x90] sm:$0xff] }
  0x13   : > { %344 = vmatpush.msra.mxu1 %v285_v8  ;;  %v269_v17 = vld [vmem:[#allocation2] sm:$0xff]  ;;  %v860_v37 = vld [vmem:[%s1684_s1 + $0x88] sm:$0xff]  ;;  %v1067_v43 = vld [vmem:[%s1686_s3 + $0xf0] sm:$0xff] }
  0x14   : > { %316 = vmatpush.msra.mxu2 %v850_v9  ;;  %v273_v22 = vrot.slane %v269_v17, 7  ;;  %v859_v38 = vld [vmem:[%s1684_s1 + $0x80] sm:$0xff]  ;;  %v272_v40 = vld [vmem:[#allocation2 + $0x18] sm:$0xff]  ;;  %418 = vmatpush.msra.mxu3 %v1067_v43  ;;  %v1084_v46 = vld [vmem:[%s1686_s3 + $0x1f0] sm:$0xff] }
  0x15   : > { %345 = vmatpush.msra.mxu1 %v284_v12  ;;  %v358_v41 = vrot.slane %v272_v40, 1  ;;  %v1072_v44 = vld [vmem:[%s1686_s3 + $0xf8] sm:$0xff]  ;;  %v1077_v45 = vld [vmem:[%s1686_s3 + $0xe0] sm:$0xff]  ;;  %v1089_v47 = vld [vmem:[%s1686_s3 + $0xe8] sm:$0xff]  ;;  %438 = vmatpush.msra.mxu0 %v1084_v46 }
  0x16   : > { %317 = vmatpush.msra.mxu2 %v849_v14  ;;  %v1094_v48 = vld [vmem:[%s1686_s3 + $0x1f8] sm:$0xff]  ;;  %v1101_v49 = vld [vmem:[%s1686_s3 + $0xd0] sm:$0xff]  ;;  %v1106_v50 = vld [vmem:[%s1686_s3 + $0x1e0] sm:$0xff]  ;;  %419 = vmatpush.msra.mxu3 %v1077_v45 }
  0x17   : > { %346 = vmatpush.msra.mxu1 %v283_v15  ;;  %v1111_v51 = vld [vmem:[%s1686_s3 + $0xd8] sm:$0xff]  ;;  %v1118_v52 = vld [vmem:[%s1686_s3 + $0x1e8] sm:$0xff]  ;;  %439 = vmatpush.msra.mxu0 %v1106_v50  ;;  %v1127_v53 = vld [vmem:[%s1686_s3 + $0xc0] sm:$0xff] }
  0x18   : > { %318 = vmatpush.msra.mxu2 %v848_v16  ;;  %v270_v23 = vld [vmem:[#allocation2 + $0x8] sm:$0xff]  ;;  %420 = vmatpush.msra.mxu3 %v1101_v49  ;;  %v1132_v54 = vld [vmem:[%s1686_s3 + $0x1d0] sm:$0xff]  ;;  %v1144_v56 = vld [vmem:[%s1686_s3 + $0x1d8] sm:$0xff] }
  0x19   : > { %347 = vmatpush.msra.mxu1 %v282_v19  ;;  %v274_v25 = vrot.slane %v270_v23, 7  ;;  %v271_v29 = vld [vmem:[#allocation2 + $0x10] sm:$0xff]  ;;  %v356_v35 = vrot.slane %v270_v23, 1  ;;  %v1137_v55 = vld [vmem:[%s1686_s3 + $0xc8] sm:$0xff]  ;;  %440 = vmatpush.msra.mxu0 %v1132_v54  ;;  %v1156_v58 = vld [vmem:[%s1686_s3 + $0x1c0] sm:$0xff] }
  0x1a   : > { %319 = vmatpush.msra.mxu2 %v847_v20  ;;  %v275_v30 = vrot.slane %v271_v29, 7  ;;  %v357_v36 = vrot.slane %v271_v29, 1  ;;  %421 = vmatpush.msra.mxu3 %v1127_v53  ;;  %v1151_v57 = vld [vmem:[%s1686_s3 + $0xb0] sm:$0xff]  ;;  %v1161_v59 = vld [vmem:[%s1686_s3 + $0xb8] sm:$0xff]  ;;  %v1168_v60 = vld [vmem:[%s1686_s3 + $0x1c8] sm:$0xff] }
  0x1b   : > { %855 = vmatmul.msk.f32.vlgmr.msra.gmra.mxu2 %vm264_vm0, %v270_v23  ;;  %348 = vmatpush.msra.mxu1 %v281_v21  ;;  %v280_v27 = vsel %vm278_vm1, %v273_v22, %v274_v25  ;;  %v1175_v61 = vld [vmem:[%s1686_s3 + $0xa0] sm:$0xff]  ;;  %v1180_v62 = vld [vmem:[%s1686_s3 + $0x1b0] sm:$0xff]  ;;  %v1185_v63 = vld [vmem:[%s1686_s3 + $0xa8] sm:$0xff] }
  0x1c   : > { %385 = vmatpush.msrb.mxu2 %v866_v24  ;;  %857 = vmatmul.msk.f32.vlgmr.msra.gmra.mxu1 %vm264_vm0, %v280_v27  ;;  %v279_v33 = vsel %vm278_vm1, %v274_v25, %v275_v30  ;;  %v361_v39 = vsel %vm359_vm2, %v356_v35, %v357_v36  ;;  %v360_v42 = vsel %vm359_vm2, %v357_v36, %v358_v41  ;;  %v1192_v0 = vld [vmem:[%s1686_s3 + $0x1b8] sm:$0xff]  ;;  %v1197_v1 = vld [vmem:[%s1686_s3 + $0x90] sm:$0xff]  ;;  %v1202_v2 = vld [vmem:[%s1686_s3 + $0x1a0] sm:$0xff] }
  0x1d   : > { %458 = vmatpush.msrb.mxu1 %v1072_v44  ;;  %422 = vmatpush.msra.mxu3 %v1151_v57  ;;  %v1209_v4 = vld [vmem:[%s1686_s3 + $0x98] sm:$0xff]  ;;  %v1214_v5 = vld [vmem:[%s1686_s3 + $0x1a8] sm:$0xff]  ;;  %v1223_v6 = vld [vmem:[%s1686_s3 + $0x80] sm:$0xff] }
  0x1e   : > { %386 = vmatpush.msrb.mxu2 %v865_v26  ;;  %441 = vmatpush.msra.mxu0 %v1156_v58  ;;  %v1228_v7 = vld [vmem:[%s1686_s3 + $0x190] sm:$0xff]  ;;  %v1233_v8 = vld [vmem:[%s1686_s3 + $0x88] sm:$0xff]  ;;  %v1240_v9 = vld [vmem:[%s1686_s3 + $0x198] sm:$0xff] }
  0x1f   : > { %459 = vmatpush.msrb.mxu1 %v1089_v47  ;;  %423 = vmatpush.msra.mxu3 %v1175_v61  ;;  %v1247_v10 = vld [vmem:[%s1686_s3 + $0x70] sm:$0xff]  ;;  %v1252_v11 = vld [vmem:[%s1686_s3 + $0x180] sm:$0xff]  ;;  %v1257_v12 = vld [vmem:[%s1686_s3 + $0x78] sm:$0xff] }
  0x20   : > { %387 = vmatpush.msrb.mxu2 %v864_v28  ;;  %442 = vmatpush.msra.mxu0 %v1180_v62  ;;  %v1264_v13 = vld [vmem:[%s1686_s3 + $0x188] sm:$0xff]  ;;  %v1271_v14 = vld [vmem:[%s1686_s3 + $0x60] sm:$0xff]  ;;  %v1276_v15 = vld [vmem:[%s1686_s3 + $0x170] sm:$0xff] }
  0x21   : > { %460 = vmatpush.msrb.mxu1 %v1111_v51  ;;  %424 = vmatpush.msra.mxu3 %v1197_v1  ;;  %v1281_v16 = vld [vmem:[%s1686_s3 + $0x68] sm:$0xff]  ;;  %v1288_v17 = vld [vmem:[%s1686_s3 + $0x178] sm:$0xff]  ;;  %v1295_v19 = vld [vmem:[%s1686_s3 + $0x50] sm:$0xff] }
  0x22   : > { %388 = vmatpush.msrb.mxu2 %v863_v31  ;;  %443 = vmatpush.msra.mxu0 %v1202_v2  ;;  %v1300_v20 = vld [vmem:[%s1686_s3 + $0x160] sm:$0xff]  ;;  %v1305_v21 = vld [vmem:[%s1686_s3 + $0x58] sm:$0xff]  ;;  %v1312_v22 = vld [vmem:[%s1686_s3 + $0x168] sm:$0xff] }
  0x23   : > { %856 = vmatmul.msk.f32.gmra.mxu2 %vm264_vm0, %v271_v29  ;;  %461 = vmatpush.msrb.mxu1 %v1137_v55  ;;  %v1317_v23 = vld [vmem:[%s1686_s3 + $0x40] sm:$0xff]  ;;  %v1322_v24 = vld [vmem:[%s1686_s3 + $0x150] sm:$0xff]  ;;  %v1329_v25 = vld [vmem:[%s1686_s3 + $0x48] sm:$0xff] }
  0x24   : > { %389 = vmatpush.msrb.mxu2 %v862_v32  ;;  %858 = vmatmul.msk.f32.gmra.mxu1 %vm264_vm0, %v279_v33  ;;  %v1334_v26 = vld [vmem:[%s1686_s3 + $0x158] sm:$0xff]  ;;  %v1339_v27 = vld [vmem:[%s1686_s3 + $0x30] sm:$0xff]  ;;  %v1346_v29 = vld [vmem:[%s1686_s3 + $0x140] sm:$0xff] }
  0x25   : > { %462 = vmatpush.msrb.mxu1 %v1161_v59  ;;  %425 = vmatpush.msra.mxu3 %v1223_v6  ;;  %v1351_v30 = vld [vmem:[%s1686_s3 + $0x38] sm:$0xff]  ;;  %v1356_v31 = vld [vmem:[%s1686_s3 + $0x148] sm:$0xff]  ;;  %v1363_v32 = vld [vmem:[%s1686_s3 + $0x20] sm:$0xff] }
  0x26   : > { %390 = vmatpush.msrb.mxu2 %v861_v34  ;;  %444 = vmatpush.msra.mxu0 %v1228_v7  ;;  %v1368_v33 = vld [vmem:[%s1686_s3 + $0x130] sm:$0xff]  ;;  %v1375_v34 = vld [vmem:[%s1686_s3 + $0x28] sm:$0xff]  ;;  %v1380_v35 = vld [vmem:[%s1686_s3 + $0x138] sm:$0xff] }
  0x27   : > { %463 = vmatpush.msrb.mxu1 %v1185_v63  ;;  %426 = vmatpush.msra.mxu3 %v1247_v10  ;;  %1702 = vst [vmem:[#allocation5_spill] sm:$0xff] %v1375_v34  ;;  %v200_v36 = vld [vmem:[%s1686_s3 + $0x10] sm:$0xff]  ;;  %v198_v40 = vld [vmem:[%s1686_s3] sm:$0xff]  ;;  %v1423_v3 = vld [vmem:[%s1686_s3 + $0x118] sm:$0xff] }
  0x28   : > { %391 = vmatpush.msrb.mxu2 %v860_v37  ;;  %445 = vmatpush.msra.mxu0 %v1252_v11  ;;  %1703 = vst [vmem:[#allocation6_spill] sm:$0xff] %v1380_v35  ;;  %v1390_v37 = vld [vmem:[%s1686_s3 + $0x120] sm:$0xff]  ;;  %v1412_v41 = vld [vmem:[%s1686_s3 + $0x110] sm:$0xff] }
  0x29   : > { %464 = vmatpush.msrb.mxu1 %v1209_v4  ;;  %427 = vmatpush.msra.mxu3 %v1271_v14  ;;  %1704 = vst [vmem:[#allocation7_spill] sm:$0xff] %v1390_v37 }
  0x2a   : > { %392 = vmatpush.msrb.mxu2 %v859_v38  ;;  %446 = vmatpush.msra.mxu0 %v1276_v15  ;;  %v1397_v38 = vld [vmem:[%s1686_s3 + $0x18] sm:$0xff]  ;;  %1707 = vst [vmem:[#allocation10_spill] sm:$0xff] %v1412_v41 }
  0x2b   : > { %867 = vmatmul.msk.f32.vlgmr.msrb.gmra.mxu2 %vm264_vm0, %v361_v39  ;;  %465 = vmatpush.msrb.mxu1 %v1233_v8  ;;  %1705 = vst [vmem:[#allocation8_spill] sm:$0xff] %v1397_v38  ;;  %v1402_v39 = vld [vmem:[%s1686_s3 + $0x128] sm:$0xff] }
  0x2c   : > { %478 = vmatpush.msra.mxu2 %v1094_v48  ;;  %428 = vmatpush.msra.mxu3 %v1295_v19  ;;  %1706 = vst [vmem:[#allocation9_spill] sm:$0xff] %v1402_v39 }
  0x2d   : > { %466 = vmatpush.msrb.mxu1 %v1257_v12  ;;  %447 = vmatpush.msra.mxu0 %v1300_v20  ;;  %1709 = vst [vmem:[#allocation12_spill] sm:$0xff] %v1423_v3 }
  0x2e   : > { %479 = vmatpush.msra.mxu2 %v1118_v52  ;;  %429 = vmatpush.msra.mxu3 %v1317_v23 }
  0x2f   : > { %467 = vmatpush.msrb.mxu1 %v1281_v16  ;;  %448 = vmatpush.msra.mxu0 %v1322_v24 }
  0x30   : > { %480 = vmatpush.msra.mxu2 %v1144_v56  ;;  %430 = vmatpush.msra.mxu3 %v1339_v27 }
  0x31   : > { %468 = vmatpush.msrb.mxu1 %v1305_v21  ;;  %449 = vmatpush.msra.mxu0 %v1346_v29 }
  0x32   : > { %481 = vmatpush.msra.mxu2 %v1168_v60  ;;  %431 = vmatpush.msra.mxu3 %v1363_v32 }
  0x33   : > { %868 = vmatmul.msk.f32.gmra.mxu2 %vm264_vm0, %v360_v42  ;;  %469 = vmatpush.msrb.mxu1 %v1329_v25  ;;  %v1418_v42 = vld [vmem:[%s1686_s3 + $0x8] sm:$0xff] }
  0x34   : > { %482 = vmatpush.msra.mxu2 %v1192_v0  ;;  %450 = vmatpush.msra.mxu0 %v1368_v33  ;;  %1708 = vst [vmem:[#allocation11_spill] sm:$0xff] %v1418_v42 }
  0x35   : > { %470 = vmatpush.msrb.mxu1 %v1351_v30  ;;  %432 = vmatpush.msra.mxu3 %v200_v36 }
  0x36   : > { %483 = vmatpush.msra.mxu2 %v1214_v5  ;;  %451 = vmatpush.msra.mxu0 %v1390_v37  ;;  %v1438_v37 = vld [vmem:[%s1686_s3 + $0x108] sm:$0xff] }
  0x37   : > { %471 = vmatpush.msrb.mxu1 %v1375_v34  ;;  %433 = vmatpush.msra.mxu3 %v198_v40  ;;  %v1433_v34 = vld [vmem:[%s1686_s3 + $0x100] sm:$0xff] }
  0x38   : > { %484 = vmatpush.msra.mxu2 %v1240_v9  ;;  %452 = vmatpush.msra.mxu0 %v1412_v41  ;;  %1710 = vst [vmem:[#allocation13_spill] sm:$0xff] %v1433_v34 }
  0x39   : > { %472 = vmatpush.msrb.mxu1 %v1397_v38 }
  0x3a   : > { %485 = vmatpush.msra.mxu2 %v1264_v13  ;;  %453 = vmatpush.msra.mxu0 %v1433_v34 }
  0x3b   : > { %473 = vmatpush.msrb.mxu1 %v1418_v42 }
  0x3c   : > { %486 = vmatpush.msra.mxu2 %v1288_v17 }
  0x3e   : > { %487 = vmatpush.msra.mxu2 %v1312_v22 }
  0x40   : > { %488 = vmatpush.msra.mxu2 %v1334_v26 }
  0x42   : > { %489 = vmatpush.msra.mxu2 %v1356_v31 }
  0x44   : > { %490 = vmatpush.msra.mxu2 %v1380_v35 }
  0x46   : > { %491 = vmatpush.msra.mxu2 %v1402_v39 }
  0x48   : > { %492 = vmatpush.msra.mxu2 %v1423_v3 }
  0x4a   : > { %493 = vmatpush.msra.mxu2 %v1438_v37 }
  0x4c   : > { %677 = vmatpush.msrb.mxu2 %v1067_v43 }
  0x4e   : > { %678 = vmatpush.msrb.mxu2 %v1077_v45 }
  0x50   : > { %679 = vmatpush.msrb.mxu2 %v1101_v49 }
  0x52   : > { %680 = vmatpush.msrb.mxu2 %v1127_v53 }
  0x54   : > { %681 = vmatpush.msrb.mxu2 %v1151_v57 }
  0x56   : > { %682 = vmatpush.msrb.mxu2 %v1175_v61 }
  0x58   : > { %683 = vmatpush.msrb.mxu2 %v1197_v1 }
  0x5a   : > { %684 = vmatpush.msrb.mxu2 %v1223_v6 }
  0x5c   : > { %685 = vmatpush.msrb.mxu2 %v1247_v10 }
  0x5e   : > { %686 = vmatpush.msrb.mxu2 %v1271_v14 }
  0x60   : > { %687 = vmatpush.msrb.mxu2 %v1295_v19  ;;  %v884_v19 = vld [vmem:[%s1685_s2 + $0xf8] sm:$0xff] }
  0x61   : > { %568 = vmatpush.msrb.mxu3 %v884_v19  ;;  %v543_v19 = vld [vmem:[%s1685_s2 + $0x40] sm:$0xff] }
  0x62   : > { %688 = vmatpush.msrb.mxu2 %v1317_v23  ;;  %v883_v23 = vld [vmem:[%s1685_s2 + $0xf0] sm:$0xff] }
  0x63   : > { %569 = vmatpush.msrb.mxu3 %v883_v23  ;;  %v893_v23 = vld [vmem:[%s1685_s2 + $0x140] sm:$0xff] }
  0x64   : > { %689 = vmatpush.msrb.mxu2 %v1339_v27  ;;  %v550_v27 = vld [vmem:[%s1685_s2 + $0x78] sm:$0xff] }
  0x65   : > { %591 = vmatpush.msrb.mxu0 %v550_v27  ;;  %v875_v27 = vld [vmem:[%s1685_s2 + $0xb0] sm:$0xff] }
  0x66   : > { %690 = vmatpush.msrb.mxu2 %v1363_v32  ;;  %v900_v32 = vld [vmem:[%s1685_s2 + $0x178] sm:$0xff] }
  0x67   : > { %636 = vmatpush.msra.mxu1 %v900_v32  ;;  %v542_v32 = vld [vmem:[%s1685_s2 + $0x38] sm:$0xff] }
  0x68   : > { %691 = vmatpush.msrb.mxu2 %v200_v36  ;;  %v882_v36 = vld [vmem:[%s1685_s2 + $0xe8] sm:$0xff] }
  0x69   : > { %570 = vmatpush.msrb.mxu3 %v882_v36  ;;  %v892_v36 = vld [vmem:[%s1685_s2 + $0x138] sm:$0xff] }
  0x6a   : > { %692 = vmatpush.msrb.mxu2 %v198_v40  ;;  %v549_v40 = vld [vmem:[%s1685_s2 + $0x70] sm:$0xff] }
  0x6b   : > { %592 = vmatpush.msrb.mxu0 %v549_v40  ;;  %v874_v40 = vld [vmem:[%s1685_s2 + $0xa8] sm:$0xff] }
  0x99   : > { %v350_v38 = vpop.f32.mrf.mxu1 }
  0x9e   : > { %v321_v28 = vpop.f32.mrf.mxu2 }
  0x9f   : > { %v351_v41 = vadd.f32 %v350_v38, %v321_v28 }
  0xa1   : > { %v353_v3 = vpop.f32.mrf.mxu1 }
  0xa6   : > { %v324_v18 = vpop.f32.mrf.mxu2 }
  0xa7   : > { %v354_v39 = vadd.f32 %v353_v3, %v324_v18 }
  0xae   : > { %v394_v42 = vpop.f32.mrf.mxu2 }
  0xaf   : > { %v1448_v35 = vadd.f32 %v394_v42, %v351_v41  ;;  %v899_v42 = vld [vmem:[%s1685_s2 + $0x170] sm:$0xff] }
  0xb0   : > { %637 = vmatpush.msra.mxu1 %v899_v42  ;;  %v541_v42 = vld [vmem:[%s1685_s2 + $0x30] sm:$0xff] }
  0xb1   : > { %v409_v45 = vmul.f32 %v1448_v35, %v1448_v35 }
  0xb6   : > { %v397_v34 = vpop.f32.mrf.mxu2 }
  0xb7   : > { %v1451_v43 = vadd.f32 %v397_v34, %v354_v39 }
  0xb9   : > { %v402_v49 = vadd.f32 %v1451_v43, %v1448_v35  ;;  %v410_v53 = vmul.f32 %v1451_v43, %v1451_v43 }
  0xbb   : > { %v403_v3 = vrot.slane %v402_v49, 4  ;;  %v411_v18 = vadd.f32 %v410_v53, %v409_v45  ;;  %v881_v45 = vld [vmem:[%s1685_s2 + $0xe0] sm:$0xff]  ;;  %v898_v53 = vld [vmem:[%s1685_s2 + $0x168] sm:$0xff] }
  0xbc   : > { %571 = vmatpush.msrb.mxu3 %v881_v45  ;;  %638 = vmatpush.msra.mxu1 %v898_v53  ;;  %v891_v45 = vld [vmem:[%s1685_s2 + $0x130] sm:$0xff]  ;;  %v540_v53 = vld [vmem:[%s1685_s2 + $0x28] sm:$0xff] }
  0xbd   : > { %v404_v57 = vadd.f32 %v403_v3, %v402_v49  ;;  %v412_v61 = vrot.slane %v411_v18, 4  ;;  %v548_v49 = vld [vmem:[%s1685_s2 + $0x68] sm:$0xff]  ;;  %v880_v3 = vld [vmem:[%s1685_s2 + $0xd8] sm:$0xff] }
  0xbe   : > { %593 = vmatpush.msrb.mxu0 %v548_v49  ;;  %572 = vmatpush.msrb.mxu3 %v880_v3  ;;  %v873_v49 = vld [vmem:[%s1685_s2 + $0xa0] sm:$0xff]  ;;  %v890_v3 = vld [vmem:[%s1685_s2 + $0x128] sm:$0xff] }
  0xbf   : > { %v405_v1 = vrot.slane %v404_v57, 2  ;;  %v413_v6 = vadd.f32 %v412_v61, %v411_v18  ;;  %v547_v18 = vld [vmem:[%s1685_s2 + $0x60] sm:$0xff]  ;;  %v879_v61 = vld [vmem:[%s1685_s2 + $0xd0] sm:$0xff] }
  0xc0   : > { %594 = vmatpush.msrb.mxu0 %v547_v18  ;;  %573 = vmatpush.msrb.mxu3 %v879_v61  ;;  %v872_v18 = vld [vmem:[%s1685_s2 + $0x98] sm:$0xff]  ;;  %v889_v61 = vld [vmem:[%s1685_s2 + $0x120] sm:$0xff] }
  0xc1   : > { %v406_v28 = vadd.f32 %v405_v1, %v404_v57  ;;  %v414_v34 = vrot.slane %v413_v6, 2  ;;  %v897_v57 = vld [vmem:[%s1685_s2 + $0x160] sm:$0xff]  ;;  %v546_v1 = vld [vmem:[%s1685_s2 + $0x58] sm:$0xff] }
  0xc2   : > { %639 = vmatpush.msra.mxu1 %v897_v57  ;;  %595 = vmatpush.msrb.mxu0 %v546_v1  ;;  %v539_v57 = vld [vmem:[%s1685_s2 + $0x20] sm:$0xff]  ;;  %v871_v1 = vld [vmem:[%s1685_s2 + $0x90] sm:$0xff] }
  0xc3   : > { %v407_v38 = vrot.slane %v406_v28, 1  ;;  %v415_v39 = vadd.f32 %v414_v34, %v413_v6  ;;  %v896_v6 = vld [vmem:[%s1685_s2 + $0x158] sm:$0xff]  ;;  %v545_v34 = vld [vmem:[%s1685_s2 + $0x50] sm:$0xff] }
  0xc4   : > { %640 = vmatpush.msra.mxu1 %v896_v6  ;;  %596 = vmatpush.msrb.mxu0 %v545_v34  ;;  %v538_v6 = vld [vmem:[%s1685_s2 + $0x18] sm:$0xff]  ;;  %v870_v34 = vld [vmem:[%s1685_s2 + $0x88] sm:$0xff] }
  0xc5   : > { %v408_v10 = vadd.f32 %v407_v38, %v406_v28  ;;  %v416_v41 = vrot.slane %v415_v39, 1  ;;  %v878_v28 = vld [vmem:[%s1685_s2 + $0xc8] sm:$0xff]  ;;  %v895_v38 = vld [vmem:[%s1685_s2 + $0x150] sm:$0xff] }
  0xc6   : > { %574 = vmatpush.msrb.mxu3 %v878_v28  ;;  %641 = vmatpush.msra.mxu1 %v895_v38  ;;  %v888_v28 = vld [vmem:[%s1685_s2 + $0x118] sm:$0xff] }
  0xc7   : > { %434 = vmatmul.f32.vlgmr.msra.gmra.mxu3 %v408_v10  ;;  %474 = vmatmul.f32.vlgmr.msrb.gmra.mxu1 %v408_v10  ;;  %v417_v14 = vadd.f32 %v416_v41, %v415_v39  ;;  %v877_v39 = vld [vmem:[%s1685_s2 + $0xc0] sm:$0xff]  ;;  %v544_v10 = vld [vmem:[%s1685_s2 + $0x48] sm:$0xff] }
  0xc8   : > { %575 = vmatpush.msrb.mxu3 %v877_v39  ;;  %v894_v41 = vld [vmem:[%s1685_s2 + $0x148] sm:$0xff]  ;;  %597 = vmatpush.msrb.mxu0 %v544_v10  ;;  %v537_v10 = vld [vmem:[%s1685_s2 + $0x10] sm:$0xff] }
  0xc9   : > { %454 = vmatmul.f32.vlgmr.msra.gmra.mxu0 %v417_v14  ;;  %494 = vmatmul.f32.vlgmr.msra.gmra.mxu2 %v417_v14  ;;  %v876_v14 = vld [vmem:[%s1685_s2 + $0xb8] sm:$0xff] }
  0xca   : > { %642 = vmatpush.msra.mxu1 %v894_v41  ;;  %576 = vmatpush.msrb.mxu3 %v876_v14  ;;  %v887_v41 = vld [vmem:[%s1685_s2 + $0x110] sm:$0xff] }
  0xcb   : > { %598 = vmatpush.msrb.mxu0 %v543_v19  ;;  %v869_v19 = vld [vmem:[%s1685_s2 + $0x80] sm:$0xff] }
  0xcc   : > { %643 = vmatpush.msra.mxu1 %v893_v23  ;;  %577 = vmatpush.msrb.mxu3 %v875_v27 }
  0xcd   : > { %599 = vmatpush.msrb.mxu0 %v542_v32 }
  0xce   : > { %644 = vmatpush.msra.mxu1 %v892_v36  ;;  %578 = vmatpush.msrb.mxu3 %v874_v40  ;;  %v536_v40 = vld [vmem:[%s1685_s2 + $0x8] sm:$0xff] }
  0xcf   : > { %600 = vmatpush.msrb.mxu0 %v541_v42  ;;  %v886_v42 = vld [vmem:[%s1685_s2 + $0x108] sm:$0xff] }
  0xd0   : > { %645 = vmatpush.msra.mxu1 %v891_v45  ;;  %579 = vmatpush.msrb.mxu3 %v873_v49 }
  0xd1   : > { %601 = vmatpush.msrb.mxu0 %v540_v53  ;;  %v535_v53 = vld [vmem:[%s1685_s2] sm:$0xff] }
  0xd2   : > { %646 = vmatpush.msra.mxu1 %v890_v3  ;;  %580 = vmatpush.msrb.mxu3 %v872_v18  ;;  %v885_v3 = vld [vmem:[%s1685_s2 + $0x100] sm:$0xff] }
  0xd3   : > { %602 = vmatpush.msrb.mxu0 %v539_v57 }
  0xd4   : > { %647 = vmatpush.msra.mxu1 %v889_v61  ;;  %581 = vmatpush.msrb.mxu3 %v871_v1 }
  0xd5   : > { %603 = vmatpush.msrb.mxu0 %v538_v6 }
  0xd6   : > { %648 = vmatpush.msra.mxu1 %v888_v28  ;;  %582 = vmatpush.msrb.mxu3 %v870_v34 }
  0xd7   : > { %604 = vmatpush.msrb.mxu0 %v537_v10 }
  0xd8   : > { %649 = vmatpush.msra.mxu1 %v887_v41  ;;  %583 = vmatpush.msrb.mxu3 %v869_v19 }
  0xd9   : > { %605 = vmatpush.msrb.mxu0 %v536_v40 }
  0xda   : > { %650 = vmatpush.msra.mxu1 %v886_v42  ;;  %697 = vmatpush.msra.mxu3 %v1084_v46 }
  0xdb   : > { %606 = vmatpush.msrb.mxu0 %v535_v53 }
  0xdc   : > { %651 = vmatpush.msra.mxu1 %v885_v3  ;;  %698 = vmatpush.msra.mxu3 %v1106_v50 }
  0xdd   : > { %717 = vmatpush.msra.mxu0 %v1072_v44 }
  0xde   : > { %737 = vmatpush.msrb.mxu1 %v1094_v48  ;;  %699 = vmatpush.msra.mxu3 %v1132_v54 }
  0xdf   : > { %718 = vmatpush.msra.mxu0 %v1089_v47 }
  0xe0   : > { %738 = vmatpush.msrb.mxu1 %v1118_v52  ;;  %700 = vmatpush.msra.mxu3 %v1156_v58 }
  0xe1   : > { %719 = vmatpush.msra.mxu0 %v1111_v51 }
  0xe2   : > { %739 = vmatpush.msrb.mxu1 %v1144_v56  ;;  %701 = vmatpush.msra.mxu3 %v1180_v62 }
  0xe3   : > { %720 = vmatpush.msra.mxu0 %v1137_v55 }
  0xe4   : > { %740 = vmatpush.msrb.mxu1 %v1168_v60  ;;  %702 = vmatpush.msra.mxu3 %v1202_v2  ;;  %v1714_v2 = vld [vmem:[#allocation9_spill] sm:$0xff] }
  0xe5   : > { %721 = vmatpush.msra.mxu0 %v1161_v59  ;;  %v1711_v59 = vld [vmem:[#allocation6_spill] sm:$0xff] }
  0xe6   : > { %741 = vmatpush.msrb.mxu1 %v1192_v0  ;;  %703 = vmatpush.msra.mxu3 %v1228_v7  ;;  %v1713_v0 = vld [vmem:[#allocation5_spill] sm:$0xff]  ;;  %v1715_v7 = vmov 0.0  }
  0xe7   : > { %722 = vmatpush.msra.mxu0 %v1185_v63  ;;  %v1712_v63 = vld [vmem:[#allocation7_spill] sm:$0xff] }
  0xe8   : > { %742 = vmatpush.msrb.mxu1 %v1214_v5  ;;  %704 = vmatpush.msra.mxu3 %v1252_v11  ;;  %v1717_v11 = vld [vmem:[#allocation8_spill] sm:$0xff] }
  0xe9   : > { %723 = vmatpush.msra.mxu0 %v1209_v4 }
  0xea   : > { %743 = vmatpush.msrb.mxu1 %v1240_v9  ;;  %705 = vmatpush.msra.mxu3 %v1276_v15  ;;  %v1716_v9 = vld [vmem:[#allocation10_spill] sm:$0xff] }
  0xeb   : > { %724 = vmatpush.msra.mxu0 %v1233_v8  ;;  %v530_v8 = vrot.slane %v1715_v7, 7 }
  0xec   : > { %744 = vmatpush.msrb.mxu1 %v1264_v13  ;;  %706 = vmatpush.msra.mxu3 %v1300_v20  ;;  %v1720_v20 = vld [vmem:[#allocation13_spill] sm:$0xff] }
  0xed   : > { %725 = vmatpush.msra.mxu0 %v1257_v12  ;;  %v1718_v12 = vld [vmem:[#allocation12_spill] sm:$0xff] }
  0xee   : > { %745 = vmatpush.msrb.mxu1 %v1288_v17  ;;  %707 = vmatpush.msra.mxu3 %v1322_v24  ;;  %v1719_v17 = vld [vmem:[#allocation11_spill] sm:$0xff] }
  0xef   : > { %726 = vmatpush.msra.mxu0 %v1281_v16 }
  0xf0   : > { %746 = vmatpush.msrb.mxu1 %v1312_v22  ;;  %708 = vmatpush.msra.mxu3 %v1346_v29 }
  0xf1   : > { %727 = vmatpush.msra.mxu0 %v1305_v21 }
  0xf2   : > { %747 = vmatpush.msrb.mxu1 %v1334_v26  ;;  %709 = vmatpush.msra.mxu3 %v1368_v33  ;;  %v616_v26 = vrot.slane %v1715_v7, 1 }
  0xf3   : > { %728 = vmatpush.msra.mxu0 %v1329_v25 }
  0xf4   : > { %748 = vmatpush.msrb.mxu1 %v1356_v31  ;;  %710 = vmatpush.msra.mxu3 %v1712_v63 }
  0xf5   : > { %729 = vmatpush.msra.mxu0 %v1351_v30 }
  0xf6   : > { %749 = vmatpush.msrb.mxu1 %v1711_v59  ;;  %711 = vmatpush.msra.mxu3 %v1716_v9 }
  0xf7   : > { %730 = vmatpush.msra.mxu0 %v1713_v0 }
  0xf8   : > { %750 = vmatpush.msrb.mxu1 %v1714_v2  ;;  %712 = vmatpush.msra.mxu3 %v1720_v20 }
  0xf9   : > { %731 = vmatpush.msra.mxu0 %v1717_v11 }
  0xfa   : > { %751 = vmatpush.msrb.mxu1 %v1718_v12 }
  0xfb   : > { %732 = vmatpush.msra.mxu0 %v1719_v17 }
  0xfc   : > { %752 = vmatpush.msrb.mxu1 %v1438_v37 }
 0x144   : > { %v475_v23 = vpop.f32.mrf.mxu1 }
 0x146   : > { %v455_v38 = vpop.f32.mrf.mxu0 }
 0x14a   : > { %v435_v39 = vpop.f32.mrf.mxu3 }
 0x14b   : > { %v456_v14 = vadd.f32 %v455_v38, %v435_v39 }
 0x14c   : > { %v495_v27 = vpop.f32.mrf.mxu2 }
 0x14d   : > { %v1598_v32 = vmul.f32 0.00390625, %v456_v14  ;;  %v496_v36 = vadd.f32 %v495_v27, %v475_v23 }
 0x14f   : > { %v500_v45 = vmul.f32 %v1598_v32, %v1598_v32  ;;  %v499_v49 = vmul.f32 0.00390625, %v496_v36  ;;  %v503_v51 = vperm.slane %v1598_v32, 0 }
 0x151   : > { %v501_v18 = vsub.f32 %v499_v49, %v500_v45  ;;  %v504_v55 = vsub.f32 %v1448_v35, %v503_v51  ;;  %v505_v56 = vsub.f32 %v1451_v43, %v503_v51 }
 0x153   : > { %v502_v57 = vmax.f32 %v501_v18, 0.0 }
 0x155   : > { %v506_v61 = vadd.f32 1e-05, %v502_v57 }
 0x157   : > { %914 = vrsqrt.f32 %v506_v61  ;;  %vm513_vm4 = vweird.f32 %v506_v61 }
 0x15d   : > { %v915_v44 = vpop.eup %914 }
 0x15e   : > { %v508_v46 = vmul.f32 %v915_v44, %v506_v61  ;;  %vm514_vm3 = vweird.f32 %v915_v44 }
 0x15f   : > { %vm515_vm5 = vmor %vm513_vm4, %vm514_vm3 }
 0x160   : > { %v509_v47 = vmul.f32 %v915_v44, %v508_v46 }
 0x162   : > { %v510_v48 = vmul.f32 0.5, %v509_v47 }
 0x164   : > { %v511_v50 = vsub.f32 1.5, %v510_v48 }
 0x166   : > { %v512_v52 = vmul.f32 %v915_v44, %v511_v50 }
 0x168   : > { %v516_v54 = vsel %vm515_vm5, %v915_v44, %v512_v52 }
 0x169   : > { %v517_v58 = vperm.slane %v516_v54, 0 }
 0x16b   : > { %v518_v60 = vmul.f32 %v517_v58, %v504_v55  ;;  %v519_v62 = vmul.f32 %v517_v58, %v505_v56 }
 0x16d   : > { %v520_v4 = vmax.f32 %v518_v60, 0.0  ;;  %v521_v5 = vmax.f32 %v519_v62, 0.0 }
 0x16f   : > { %584 = vmatmul.f32.vlgmr.msrb.gmra.mxu3 %v520_v4  ;;  %v531_v13 = vrot.slane %v520_v4, 7  ;;  %v614_v15 = vrot.slane %v520_v4, 1  ;;  %v615_v16 = vrot.slane %v521_v5, 1  ;;  %v532_v25 = vrot.slane %v521_v5, 7 }
 0x171   : > { %v534_v22 = vsel %vm278_vm1, %v530_v8, %v531_v13  ;;  %v618_v24 = vsel %vm359_vm2, %v614_v15, %v615_v16  ;;  %v533_v29 = vsel %vm278_vm1, %v531_v13, %v532_v25  ;;  %v617_v30 = vsel %vm359_vm2, %v615_v16, %v616_v26 }
 0x172   : > { %607 = vmatmul.f32.vlgmr.msrb.gmra.mxu0 %v534_v22  ;;  %652 = vmatmul.f32.vlgmr.msra.gmra.mxu1 %v618_v24 }
 0x177   : > { %587 = vmatmul.f32.gmra.mxu3 %v521_v5 }
 0x17a   : > { %610 = vmatmul.f32.gmra.mxu0 %v533_v29  ;;  %655 = vmatmul.f32.gmra.mxu1 %v617_v30 }
 0x1ef   : > { %v608_v31 = vpop.f32.mrf.mxu0  ;;  %v653_v33 = vpop.f32.mrf.mxu1 }
 0x1f2   : > { %v585_v35 = vpop.f32.mrf.mxu3 }
 0x1f3   : > { %v609_v43 = vadd.f32 %v608_v31, %v585_v35 }
 0x1f5   : > { %v659_v6 = vadd.f32 %v653_v33, %v609_v43 }
 0x1f7   : > { %v611_v1 = vpop.f32.mrf.mxu0  ;;  %v656_v34 = vpop.f32.mrf.mxu1  ;;  %v668_v39 = vmul.f32 %v659_v6, %v659_v6 }
 0x1fa   : > { %v588_v37 = vpop.f32.mrf.mxu3 }
 0x1fb   : > { %v612_v28 = vadd.f32 %v611_v1, %v588_v37 }
 0x1fd   : > { %v660_v38 = vadd.f32 %v656_v34, %v612_v28 }
 0x1ff   : > { %v661_v10 = vadd.f32 %v660_v38, %v659_v6  ;;  %v669_v41 = vmul.f32 %v660_v38, %v660_v38 }
 0x201   : > { %v662_v14 = vrot.slane %v661_v10, 4  ;;  %v670_v19 = vadd.f32 %v669_v41, %v668_v39 }
 0x203   : > { %v663_v23 = vadd.f32 %v662_v14, %v661_v10  ;;  %v671_v27 = vrot.slane %v670_v19, 4 }
 0x205   : > { %v664_v32 = vrot.slane %v663_v23, 2  ;;  %v672_v36 = vadd.f32 %v671_v27, %v670_v19 }
 0x207   : > { %v665_v40 = vadd.f32 %v664_v32, %v663_v23  ;;  %v673_v42 = vrot.slane %v672_v36, 2 }
 0x209   : > { %v666_v45 = vrot.slane %v665_v40, 1  ;;  %v674_v49 = vadd.f32 %v673_v42, %v672_v36 }
 0x20b   : > { %v667_v53 = vadd.f32 %v666_v45, %v665_v40  ;;  %v675_v3 = vrot.slane %v674_v49, 1 }
 0x20d   : > { %693 = vmatmul.f32.vlgmr.msrb.gmra.mxu2 %v667_v53  ;;  %733 = vmatmul.f32.vlgmr.msra.gmra.mxu0 %v667_v53  ;;  %v676_v18 = vadd.f32 %v675_v3, %v674_v49 }
 0x20f   : > { %713 = vmatmul.f32.vlgmr.msra.gmra.mxu3 %v676_v18  ;;  %753 = vmatmul.f32.vlgmr.msrb.gmra.mxu1 %v676_v18 }
 0x28a   : > { %v734_v61 = vpop.f32.mrf.mxu0 }
 0x28c   : > { %v754_v57 = vpop.f32.mrf.mxu1 }
 0x28d   : > { %v755_v47 = vadd.f32 %v754_v57, %v734_v61 }
 0x28f   : > { %v758_v51 = vmul.f32 0.00390625, %v755_v47 }
 0x290   : > { %v694_v44 = vpop.f32.mrf.mxu2 }
 0x292   : > { %v714_v46 = vpop.f32.mrf.mxu3 }
 0x293   : > { %v715_v48 = vadd.f32 %v714_v46, %v694_v44 }
 0x295   : > { %v757_v50 = vmul.f32 0.00390625, %v715_v48 }
 0x297   : > { %v759_v52 = vmul.f32 %v757_v50, %v757_v50  ;;  %v762_v0 = vperm.slane %v757_v50, 0 }
 0x299   : > { %v760_v54 = vsub.f32 %v758_v51, %v759_v52  ;;  %v763_v5 = vsub.f32 %v659_v6, %v762_v0  ;;  %v764_v7 = vsub.f32 %v660_v38, %v762_v0 }
 0x29b   : > { %v761_v55 = vmax.f32 %v760_v54, 0.0 }
 0x29d   : > { %v765_v56 = vadd.f32 1e-05, %v761_v55 }
 0x29f   : > { %916 = vrsqrt.f32 %v765_v56  ;;  %vm772_vm7 = vweird.f32 %v765_v56 }
 0x2a5   : > { %v917_v58 = vpop.eup %916 }
 0x2a6   : > { %v767_v59 = vmul.f32 %v917_v58, %v765_v56  ;;  %vm773_vm6 = vweird.f32 %v917_v58 }
 0x2a7   : > { %vm774_vm8 = vmor %vm772_vm7, %vm773_vm6 }
 0x2a8   : > { %v768_v60 = vmul.f32 %v917_v58, %v767_v59 }
 0x2aa   : > { %v769_v62 = vmul.f32 0.5, %v768_v60 }
 0x2ac   : > { %v770_v63 = vsub.f32 1.5, %v769_v62 }
 0x2ae   : > { %v771_v2 = vmul.f32 %v917_v58, %v770_v63 }
 0x2b0   : > { %v775_v4 = vsel %vm774_vm8, %v917_v58, %v771_v2 }
 0x2b1   : > { %v776_v8 = vperm.slane %v775_v4, 0 }
 0x2b3   : > { %v777_v9 = vmul.f32 %v776_v8, %v763_v5  ;;  %v778_v11 = vmul.f32 %v776_v8, %v764_v7 }
 0x2b5   : > { %v779_v12 = vmax.f32 %v777_v9, 0.0  ;;  %v780_v13 = vmax.f32 %v778_v11, 0.0 }
 0x2b7   : > { %781 = vst [vmem:[%s197_s18] sm:$0xff] %v779_v12 }
 0x2b8   : > { %782 = vst [vmem:[%s197_s18 + $0x8] sm:$0xff] %v780_v13 }
 0x2b9 PF: > { %s14_s15 = sadd.s32 1, %s924_s15  }
 0x2ba   : > { %p11_p4 = scmp.ge.s32.totalorder %s14_s15, 4  }
 0x2bc   :  { %13 = sbr.rel (!%p11_p4) target bundleno = 1 (0x1), region = 70 }

</bundles_post_ra>
